<compile_context>
chip_gen: v7x
topology: tpu7x:2x2x1
jax: 0.10.0
libtpu: 0.0.40
codegen_flags: <defaults>
</compile_context>

<pallas_src>
import functools

import jax
import jax.numpy as jnp
from jax.experimental import pallas as pl
from jax.experimental.pallas import tpu as pltpu


_ROWS_PER_STEP = 8  # output sublane tile height -> full (8,128) vreg stores


def _ensemble_kernel(n_models, rows,
                     uidx_ref,        # [B_pad] int32, SMEM (scalar prefetch)
                     w_ref,           # [rows, 2M] f32 VMEM block (fused weights)
                     tab_hbm,         # [n_user, 2M, I_pad] f32, HBM (pl.ANY)
                     mix_out_ref,     # [rows, I_pad] f32 VMEM block
                     trans_out_ref,   # [rows, I_pad] f32 VMEM block
                     buf,             # [rows, 2M, I_pad] f32 VMEM scratch
                     sems):           # DMA semaphores, (rows,)
    base = pl.program_id(0) * rows

    # Fused gather: one contiguous [2M, I] row copy per batch row, all `rows`
    # copies in flight at once (this op is DMA-latency bound, so concurrency
    # matters more than per-copy bandwidth).
    copies = []
    for r in range(rows):
        cp = pltpu.make_async_copy(tab_hbm.at[uidx_ref[base + r]],
                                   buf.at[r], sems.at[r])
        cp.start()
        copies.append(cp)
    for cp in copies:
        cp.wait()

    w = w_ref[...]                        # [rows, 2M]
    tab = buf[...]                        # [rows, 2M, I]
    weighted = tab * w[:, :, None]        # VPU FMAs on full tiles
    # Sublane reduce over the (small) model axis -> idle XLU slot.
    mix_out_ref[...] = jnp.sum(weighted[:, :n_models, :], axis=1)
    trans_out_ref[...] = jnp.sum(weighted[:, n_models:, :], axis=1)


def ensemble_forward(kl_tables, tp_tables, prob_preference,
                     transition_preference, user_idx):
    """Fused ensemble forward.

    kl_tables / tp_tables : [n_user, M, n_item]  frozen base-model outputs
    *_preference          : [n_user, M]          learnable preferences
    user_idx              : [B] int              batch of user ids
    returns (mixture_prob, transition_prob), each [B, n_item] float32.
    """
    n_user, n_models, n_item = kl_tables.shape
    batch = user_idx.shape[0]
    rows = _ROWS_PER_STEP

    # Fuse the two frozen tables so each row needs exactly ONE gather DMA.
    tables = jnp.concatenate(
        [kl_tables.astype(jnp.float32), tp_tables.astype(jnp.float32)], axis=1)

    # Lane-dense item axis: pad to a multiple of 128 (unmasked wide vst).
    i_pad = max(128, ((n_item + 127) // 128) * 128)
    if i_pad != n_item:
        tables = jnp.pad(tables, ((0, 0), (0, 0), (0, i_pad - n_item)))

    def run(uidx):
        uidx = jnp.clip(uidx.astype(jnp.int32), 0, n_user - 1)
        n = uidx.shape[0]
        n_pad = ((n + rows - 1) // rows) * rows

        # Tiny [n, M] softmaxes stay in plain JAX; normalized weights ride as
        # one fused [n, 2M] f32 VMEM input (kl weights first, then tp).
        pw = jax.nn.softmax(prob_preference[uidx].astype(jnp.float32), axis=-1)
        tw = jax.nn.softmax(
            transition_preference[uidx].astype(jnp.float32), axis=-1)
        weights = jnp.concatenate([pw, tw], axis=-1)

        if n_pad != n:
            uidx = jnp.pad(uidx, (0, n_pad - n))          # padded rows -> user 0
            weights = jnp.pad(weights, ((0, n_pad - n), (0, 0)))

        kernel = functools.partial(_ensemble_kernel, n_models, rows)

        cost = pl.CostEstimate(
            flops=2 * n_pad * 2 * n_models * i_pad,
            transcendentals=0,
            bytes_accessed=(n_pad * 2 * n_models * i_pad * 4   # table gathers
                            + n_pad * 2 * n_models * 4         # weights
                            + 2 * n_pad * i_pad * 4))          # outputs

        grid_spec = pltpu.PrefetchScalarGridSpec(
            num_scalar_prefetch=1,
            grid=(n_pad // rows,),
            in_specs=[
                pl.BlockSpec((rows, 2 * n_models),
                             lambda g, uidx_ref: (g, 0)),
                pl.BlockSpec(memory_space=pl.ANY),   # fused table stays in HBM
            ],
            out_specs=(
                pl.BlockSpec((rows, i_pad), lambda g, uidx_ref: (g, 0)),
                pl.BlockSpec((rows, i_pad), lambda g, uidx_ref: (g, 0)),
            ),
            scratch_shapes=[
                pltpu.VMEM((rows, 2 * n_models, i_pad), jnp.float32),
                pltpu.SemaphoreType.DMA((rows,)),
            ],
        )

        mix, trans = pl.pallas_call(
            kernel,
            out_shape=(jax.ShapeDtypeStruct((n_pad, i_pad), jnp.float32),
                       jax.ShapeDtypeStruct((n_pad, i_pad), jnp.float32)),
            grid_spec=grid_spec,
            compiler_params=pltpu.CompilerParams(
                dimension_semantics=("parallel",)),
            cost_estimate=cost,
        )(uidx, weights, tables)

        return mix[:n, :n_item], trans[:n, :n_item]

    # Dedup: both outputs depend only on the user id, so when users are fewer
    # than batch rows compute once per user and gather back with a cheap take.
    if n_user < batch:
        mix_u, trans_u = run(jnp.arange(n_user, dtype=jnp.int32))
        idx = jnp.clip(user_idx.astype(jnp.int32), 0, n_user - 1)
        return mix_u[idx], trans_u[idx]
    return run(user_idx)


def reference_forward(kl_tables, tp_tables, prob_preference,
                      transition_preference, user_idx):
    """Pure-JAX reference mirroring the PyTorch forward semantics."""
    kl = kl_tables[user_idx]                                        # [B, M, I]
    tp = tp_tables[user_idx]                                        # [B, M, I]
    pw = jax.nn.softmax(prob_preference[user_idx], -1)[:, :, None]  # [B, M, 1]
    tw = jax.nn.softmax(transition_preference[user_idx], -1)[:, :, None]
    mixture_prob = jnp.sum(kl * pw, axis=1)                         # [B, I]
    transition_prob = jnp.sum(tp * tw, axis=1)                      # [B, I]
    return mixture_prob, transition_prob


if __name__ == "__main__":
    key = jax.random.PRNGKey(0)

    n_user = 16
    n_item = 128          # item axis -> lanes (kept whole and lane-dense)
    n_models = 3          # len(kwargs['based_model'])
    batch = 16            # -> grid of 2 steps of 8 rows (both v7x cores busy)

    k_kl, k_tp, k_pp, k_tpf, k_idx = jax.random.split(key, 5)

    # Synthetic frozen base models: per-user output tables, [n_user, M, I].
    kl_tables = jax.random.normal(
        k_kl, (n_user, n_models, n_item), jnp.float32)
    tp_tables = jax.random.uniform(
        k_tp, (n_user, n_models, n_item), jnp.float32)

    # Preferences are learnable (init 1.0 in __init__); use random values here
    # so the per-model weighting is actually exercised by the check.
    prob_preference = jax.random.normal(
        k_pp, (n_user, n_models), jnp.float32)
    transition_preference = jax.random.normal(
        k_tpf, (n_user, n_models), jnp.float32)

    user_idx = jax.random.randint(k_idx, (batch,), 0, n_user)

    mixture_prob, transition_prob = ensemble_forward(
        kl_tables, tp_tables, prob_preference, transition_preference, user_idx)
    jax.block_until_ready((mixture_prob, transition_prob))

    ref_mix, ref_trans = reference_forward(
        kl_tables, tp_tables, prob_preference, transition_preference, user_idx)

    assert mixture_prob.shape == (batch, n_item)
    assert transition_prob.shape == (batch, n_item)
    assert jnp.allclose(mixture_prob, ref_mix, atol=1e-5, rtol=1e-5)
    assert jnp.allclose(transition_prob, ref_trans, atol=1e-5, rtol=1e-5)

    print("KERNEL_OK")
</pallas_src>

<mosaic_0001>
module attributes {stable_mosaic.version = 11 : i64} {
  func.func @_ensemble_kernel(%arg0: i32, %arg1: memref<16xi32, #tpu.memory_space<smem>>, %arg2: memref<8x6xf32, #tpu.memory_space<vmem>>, %arg3: memref<16x6x128xf32, #tpu.memory_space<any>>, %arg4: memref<8x128xf32, #tpu.memory_space<vmem>>, %arg5: memref<8x128xf32, #tpu.memory_space<vmem>>, %arg6: memref<8x6x128xf32, #tpu.memory_space<vmem>>, %arg7: memref<8x!tpu.dma_semaphore, #tpu.memory_space<semaphore_mem>>) attributes {dimension_semantics = [#tpu.dimension_semantics<parallel>], iteration_bounds = array<i64: 2>, scalar_prefetch = 1 : i64, scratch_operands = 2 : i64, tpu.core_type = #tpu.core_type<tc>, window_params = [{transform_indices = @transform_0, window_bounds = array<i64: 8, 6>}, {}, {transform_indices = @transform_2, window_bounds = array<i64: 8, 128>}, {transform_indices = @transform_3, window_bounds = array<i64: 8, 128>}]} {
    %c8_i32 = arith.constant 8 : i32
    %0 = arith.muli %arg0, %c8_i32 : i32
    %c0_i32 = arith.constant 0 : i32
    %1 = arith.addi %0, %c0_i32 : i32
    %2 = arith.index_cast %1 : i32 to index
    %3 = memref.load %arg1[%2] : memref<16xi32, #tpu.memory_space<smem>>
    %c0_i32_0 = arith.constant 0 : i32
    %c0_i32_1 = arith.constant 0 : i32
    %c0_i32_2 = arith.constant 0 : i32
    %c0_i32_3 = arith.constant 0 : i32
    %4 = tpu.memref_slice %arg3[%3, %c0_i32_2, %c0_i32_3] : memref<16x6x128xf32, #tpu.memory_space<any>> -> memref<1x6x128xf32, #tpu.memory_space<any>>
    %5 = tpu.memref_squeeze %4 : memref<1x6x128xf32, #tpu.memory_space<any>> -> memref<6x128xf32, #tpu.memory_space<any>>
    %c0_i32_4 = arith.constant 0 : i32
    %c0_i32_5 = arith.constant 0 : i32
    %6 = tpu.memref_slice %arg6[%c0_i32_0, %c0_i32_4, %c0_i32_5] : memref<8x6x128xf32, #tpu.memory_space<vmem>> -> memref<1x6x128xf32, #tpu.memory_space<vmem>>
    %7 = tpu.memref_squeeze %6 : memref<1x6x128xf32, #tpu.memory_space<vmem>> -> memref<6x128xf32, #tpu.memory_space<vmem>>
    %8 = tpu.memref_slice %arg7[%c0_i32_1] : memref<8x!tpu.dma_semaphore, #tpu.memory_space<semaphore_mem>> -> memref<1x!tpu.dma_semaphore, #tpu.memory_space<semaphore_mem>>
    %9 = tpu.memref_squeeze %8 : memref<1x!tpu.dma_semaphore, #tpu.memory_space<semaphore_mem>> -> memref<!tpu.dma_semaphore, #tpu.memory_space<semaphore_mem>>
    tpu.enqueue_dma source(%5 : memref<6x128xf32, #tpu.memory_space<any>>) target(%7 : memref<6x128xf32, #tpu.memory_space<vmem>>) target_semaphore(%9 : memref<!tpu.dma_semaphore, #tpu.memory_space<semaphore_mem>>)
    %c1_i32 = arith.constant 1 : i32
    %10 = arith.addi %0, %c1_i32 : i32
    %11 = arith.index_cast %10 : i32 to index
    %12 = memref.load %arg1[%11] : memref<16xi32, #tpu.memory_space<smem>>
    %c1_i32_6 = arith.constant 1 : i32
    %c1_i32_7 = arith.constant 1 : i32
    %c0_i32_8 = arith.constant 0 : i32
    %c0_i32_9 = arith.constant 0 : i32
    %13 = tpu.memref_slice %arg3[%12, %c0_i32_8, %c0_i32_9] : memref<16x6x128xf32, #tpu.memory_space<any>> -> memref<1x6x128xf32, #tpu.memory_space<any>>
    %14 = tpu.memref_squeeze %13 : memref<1x6x128xf32, #tpu.memory_space<any>> -> memref<6x128xf32, #tpu.memory_space<any>>
    %c0_i32_10 = arith.constant 0 : i32
    %c0_i32_11 = arith.constant 0 : i32
    %15 = tpu.memref_slice %arg6[%c1_i32_6, %c0_i32_10, %c0_i32_11] : memref<8x6x128xf32, #tpu.memory_space<vmem>> -> memref<1x6x128xf32, #tpu.memory_space<vmem>>
    %16 = tpu.memref_squeeze %15 : memref<1x6x128xf32, #tpu.memory_space<vmem>> -> memref<6x128xf32, #tpu.memory_space<vmem>>
    %17 = tpu.memref_slice %arg7[%c1_i32_7] : memref<8x!tpu.dma_semaphore, #tpu.memory_space<semaphore_mem>> -> memref<1x!tpu.dma_semaphore, #tpu.memory_space<semaphore_mem>>
    %18 = tpu.memref_squeeze %17 : memref<1x!tpu.dma_semaphore, #tpu.memory_space<semaphore_mem>> -> memref<!tpu.dma_semaphore, #tpu.memory_space<semaphore_mem>>
    tpu.enqueue_dma source(%14 : memref<6x128xf32, #tpu.memory_space<any>>) target(%16 : memref<6x128xf32, #tpu.memory_space<vmem>>) target_semaphore(%18 : memref<!tpu.dma_semaphore, #tpu.memory_space<semaphore_mem>>)
    %c2_i32 = arith.constant 2 : i32
    %19 = arith.addi %0, %c2_i32 : i32
    %20 = arith.index_cast %19 : i32 to index
    %21 = memref.load %arg1[%20] : memref<16xi32, #tpu.memory_space<smem>>
    %c2_i32_12 = arith.constant 2 : i32
    %c2_i32_13 = arith.constant 2 : i32
    %c0_i32_14 = arith.constant 0 : i32
    %c0_i32_15 = arith.constant 0 : i32
    %22 = tpu.memref_slice %arg3[%21, %c0_i32_14, %c0_i32_15] : memref<16x6x128xf32, #tpu.memory_space<any>> -> memref<1x6x128xf32, #tpu.memory_space<any>>
    %23 = tpu.memref_squeeze %22 : memref<1x6x128xf32, #tpu.memory_space<any>> -> memref<6x128xf32, #tpu.memory_space<any>>
    %c0_i32_16 = arith.constant 0 : i32
    %c0_i32_17 = arith.constant 0 : i32
    %24 = tpu.memref_slice %arg6[%c2_i32_12, %c0_i32_16, %c0_i32_17] : memref<8x6x128xf32, #tpu.memory_space<vmem>> -> memref<1x6x128xf32, #tpu.memory_space<vmem>>
    %25 = tpu.memref_squeeze %24 : memref<1x6x128xf32, #tpu.memory_space<vmem>> -> memref<6x128xf32, #tpu.memory_space<vmem>>
    %26 = tpu.memref_slice %arg7[%c2_i32_13] : memref<8x!tpu.dma_semaphore, #tpu.memory_space<semaphore_mem>> -> memref<1x!tpu.dma_semaphore, #tpu.memory_space<semaphore_mem>>
    %27 = tpu.memref_squeeze %26 : memref<1x!tpu.dma_semaphore, #tpu.memory_space<semaphore_mem>> -> memref<!tpu.dma_semaphore, #tpu.memory_space<semaphore_mem>>
    tpu.enqueue_dma source(%23 : memref<6x128xf32, #tpu.memory_space<any>>) target(%25 : memref<6x128xf32, #tpu.memory_space<vmem>>) target_semaphore(%27 : memref<!tpu.dma_semaphore, #tpu.memory_space<semaphore_mem>>)
    %c3_i32 = arith.constant 3 : i32
    %28 = arith.addi %0, %c3_i32 : i32
    %29 = arith.index_cast %28 : i32 to index
    %30 = memref.load %arg1[%29] : memref<16xi32, #tpu.memory_space<smem>>
    %c3_i32_18 = arith.constant 3 : i32
    %c3_i32_19 = arith.constant 3 : i32
    %c0_i32_20 = arith.constant 0 : i32
    %c0_i32_21 = arith.constant 0 : i32
    %31 = tpu.memref_slice %arg3[%30, %c0_i32_20, %c0_i32_21] : memref<16x6x128xf32, #tpu.memory_space<any>> -> memref<1x6x128xf32, #tpu.memory_space<any>>
    %32 = tpu.memref_squeeze %31 : memref<1x6x128xf32, #tpu.memory_space<any>> -> memref<6x128xf32, #tpu.memory_space<any>>
    %c0_i32_22 = arith.constant 0 : i32
    %c0_i32_23 = arith.constant 0 : i32
    %33 = tpu.memref_slice %arg6[%c3_i32_18, %c0_i32_22, %c0_i32_23] : memref<8x6x128xf32, #tpu.memory_space<vmem>> -> memref<1x6x128xf32, #tpu.memory_space<vmem>>
    %34 = tpu.memref_squeeze %33 : memref<1x6x128xf32, #tpu.memory_space<vmem>> -> memref<6x128xf32, #tpu.memory_space<vmem>>
    %35 = tpu.memref_slice %arg7[%c3_i32_19] : memref<8x!tpu.dma_semaphore, #tpu.memory_space<semaphore_mem>> -> memref<1x!tpu.dma_semaphore, #tpu.memory_space<semaphore_mem>>
    %36 = tpu.memref_squeeze %35 : memref<1x!tpu.dma_semaphore, #tpu.memory_space<semaphore_mem>> -> memref<!tpu.dma_semaphore, #tpu.memory_space<semaphore_mem>>
    tpu.enqueue_dma source(%32 : memref<6x128xf32, #tpu.memory_space<any>>) target(%34 : memref<6x128xf32, #tpu.memory_space<vmem>>) target_semaphore(%36 : memref<!tpu.dma_semaphore, #tpu.memory_space<semaphore_mem>>)
    %c4_i32 = arith.constant 4 : i32
    %37 = arith.addi %0, %c4_i32 : i32
    %38 = arith.index_cast %37 : i32 to index
    %39 = memref.load %arg1[%38] : memref<16xi32, #tpu.memory_space<smem>>
    %c4_i32_24 = arith.constant 4 : i32
    %c4_i32_25 = arith.constant 4 : i32
    %c0_i32_26 = arith.constant 0 : i32
    %c0_i32_27 = arith.constant 0 : i32
    %40 = tpu.memref_slice %arg3[%39, %c0_i32_26, %c0_i32_27] : memref<16x6x128xf32, #tpu.memory_space<any>> -> memref<1x6x128xf32, #tpu.memory_space<any>>
    %41 = tpu.memref_squeeze %40 : memref<1x6x128xf32, #tpu.memory_space<any>> -> memref<6x128xf32, #tpu.memory_space<any>>
    %c0_i32_28 = arith.constant 0 : i32
    %c0_i32_29 = arith.constant 0 : i32
    %42 = tpu.memref_slice %arg6[%c4_i32_24, %c0_i32_28, %c0_i32_29] : memref<8x6x128xf32, #tpu.memory_space<vmem>> -> memref<1x6x128xf32, #tpu.memory_space<vmem>>
    %43 = tpu.memref_squeeze %42 : memref<1x6x128xf32, #tpu.memory_space<vmem>> -> memref<6x128xf32, #tpu.memory_space<vmem>>
    %44 = tpu.memref_slice %arg7[%c4_i32_25] : memref<8x!tpu.dma_semaphore, #tpu.memory_space<semaphore_mem>> -> memref<1x!tpu.dma_semaphore, #tpu.memory_space<semaphore_mem>>
    %45 = tpu.memref_squeeze %44 : memref<1x!tpu.dma_semaphore, #tpu.memory_space<semaphore_mem>> -> memref<!tpu.dma_semaphore, #tpu.memory_space<semaphore_mem>>
    tpu.enqueue_dma source(%41 : memref<6x128xf32, #tpu.memory_space<any>>) target(%43 : memref<6x128xf32, #tpu.memory_space<vmem>>) target_semaphore(%45 : memref<!tpu.dma_semaphore, #tpu.memory_space<semaphore_mem>>)
    %c5_i32 = arith.constant 5 : i32
    %46 = arith.addi %0, %c5_i32 : i32
    %47 = arith.index_cast %46 : i32 to index
    %48 = memref.load %arg1[%47] : memref<16xi32, #tpu.memory_space<smem>>
    %c5_i32_30 = arith.constant 5 : i32
    %c5_i32_31 = arith.constant 5 : i32
    %c0_i32_32 = arith.constant 0 : i32
    %c0_i32_33 = arith.constant 0 : i32
    %49 = tpu.memref_slice %arg3[%48, %c0_i32_32, %c0_i32_33] : memref<16x6x128xf32, #tpu.memory_space<any>> -> memref<1x6x128xf32, #tpu.memory_space<any>>
    %50 = tpu.memref_squeeze %49 : memref<1x6x128xf32, #tpu.memory_space<any>> -> memref<6x128xf32, #tpu.memory_space<any>>
    %c0_i32_34 = arith.constant 0 : i32
    %c0_i32_35 = arith.constant 0 : i32
    %51 = tpu.memref_slice %arg6[%c5_i32_30, %c0_i32_34, %c0_i32_35] : memref<8x6x128xf32, #tpu.memory_space<vmem>> -> memref<1x6x128xf32, #tpu.memory_space<vmem>>
    %52 = tpu.memref_squeeze %51 : memref<1x6x128xf32, #tpu.memory_space<vmem>> -> memref<6x128xf32, #tpu.memory_space<vmem>>
    %53 = tpu.memref_slice %arg7[%c5_i32_31] : memref<8x!tpu.dma_semaphore, #tpu.memory_space<semaphore_mem>> -> memref<1x!tpu.dma_semaphore, #tpu.memory_space<semaphore_mem>>
    %54 = tpu.memref_squeeze %53 : memref<1x!tpu.dma_semaphore, #tpu.memory_space<semaphore_mem>> -> memref<!tpu.dma_semaphore, #tpu.memory_space<semaphore_mem>>
    tpu.enqueue_dma source(%50 : memref<6x128xf32, #tpu.memory_space<any>>) target(%52 : memref<6x128xf32, #tpu.memory_space<vmem>>) target_semaphore(%54 : memref<!tpu.dma_semaphore, #tpu.memory_space<semaphore_mem>>)
    %c6_i32 = arith.constant 6 : i32
    %55 = arith.addi %0, %c6_i32 : i32
    %56 = arith.index_cast %55 : i32 to index
    %57 = memref.load %arg1[%56] : memref<16xi32, #tpu.memory_space<smem>>
    %c6_i32_36 = arith.constant 6 : i32
    %c6_i32_37 = arith.constant 6 : i32
    %c0_i32_38 = arith.constant 0 : i32
    %c0_i32_39 = arith.constant 0 : i32
    %58 = tpu.memref_slice %arg3[%57, %c0_i32_38, %c0_i32_39] : memref<16x6x128xf32, #tpu.memory_space<any>> -> memref<1x6x128xf32, #tpu.memory_space<any>>
    %59 = tpu.memref_squeeze %58 : memref<1x6x128xf32, #tpu.memory_space<any>> -> memref<6x128xf32, #tpu.memory_space<any>>
    %c0_i32_40 = arith.constant 0 : i32
    %c0_i32_41 = arith.constant 0 : i32
    %60 = tpu.memref_slice %arg6[%c6_i32_36, %c0_i32_40, %c0_i32_41] : memref<8x6x128xf32, #tpu.memory_space<vmem>> -> memref<1x6x128xf32, #tpu.memory_space<vmem>>
    %61 = tpu.memref_squeeze %60 : memref<1x6x128xf32, #tpu.memory_space<vmem>> -> memref<6x128xf32, #tpu.memory_space<vmem>>
    %62 = tpu.memref_slice %arg7[%c6_i32_37] : memref<8x!tpu.dma_semaphore, #tpu.memory_space<semaphore_mem>> -> memref<1x!tpu.dma_semaphore, #tpu.memory_space<semaphore_mem>>
    %63 = tpu.memref_squeeze %62 : memref<1x!tpu.dma_semaphore, #tpu.memory_space<semaphore_mem>> -> memref<!tpu.dma_semaphore, #tpu.memory_space<semaphore_mem>>
    tpu.enqueue_dma source(%59 : memref<6x128xf32, #tpu.memory_space<any>>) target(%61 : memref<6x128xf32, #tpu.memory_space<vmem>>) target_semaphore(%63 : memref<!tpu.dma_semaphore, #tpu.memory_space<semaphore_mem>>)
    %c7_i32 = arith.constant 7 : i32
    %64 = arith.addi %0, %c7_i32 : i32
    %65 = arith.index_cast %64 : i32 to index
    %66 = memref.load %arg1[%65] : memref<16xi32, #tpu.memory_space<smem>>
    %c7_i32_42 = arith.constant 7 : i32
    %c7_i32_43 = arith.constant 7 : i32
    %c0_i32_44 = arith.constant 0 : i32
    %c0_i32_45 = arith.constant 0 : i32
    %67 = tpu.memref_slice %arg3[%66, %c0_i32_44, %c0_i32_45] : memref<16x6x128xf32, #tpu.memory_space<any>> -> memref<1x6x128xf32, #tpu.memory_space<any>>
    %68 = tpu.memref_squeeze %67 : memref<1x6x128xf32, #tpu.memory_space<any>> -> memref<6x128xf32, #tpu.memory_space<any>>
    %c0_i32_46 = arith.constant 0 : i32
    %c0_i32_47 = arith.constant 0 : i32
    %69 = tpu.memref_slice %arg6[%c7_i32_42, %c0_i32_46, %c0_i32_47] : memref<8x6x128xf32, #tpu.memory_space<vmem>> -> memref<1x6x128xf32, #tpu.memory_space<vmem>>
    %70 = tpu.memref_squeeze %69 : memref<1x6x128xf32, #tpu.memory_space<vmem>> -> memref<6x128xf32, #tpu.memory_space<vmem>>
    %71 = tpu.memref_slice %arg7[%c7_i32_43] : memref<8x!tpu.dma_semaphore, #tpu.memory_space<semaphore_mem>> -> memref<1x!tpu.dma_semaphore, #tpu.memory_space<semaphore_mem>>
    %72 = tpu.memref_squeeze %71 : memref<1x!tpu.dma_semaphore, #tpu.memory_space<semaphore_mem>> -> memref<!tpu.dma_semaphore, #tpu.memory_space<semaphore_mem>>
    tpu.enqueue_dma source(%68 : memref<6x128xf32, #tpu.memory_space<any>>) target(%70 : memref<6x128xf32, #tpu.memory_space<vmem>>) target_semaphore(%72 : memref<!tpu.dma_semaphore, #tpu.memory_space<semaphore_mem>>)
    %c0_i32_48 = arith.constant 0 : i32
    %c0_i32_49 = arith.constant 0 : i32
    %c0_i32_50 = arith.constant 0 : i32
    %c0_i32_51 = arith.constant 0 : i32
    %73 = tpu.memref_slice %arg3[%3, %c0_i32_50, %c0_i32_51] : memref<16x6x128xf32, #tpu.memory_space<any>> -> memref<1x6x128xf32, #tpu.memory_space<any>>
    %74 = tpu.memref_squeeze %73 : memref<1x6x128xf32, #tpu.memory_space<any>> -> memref<6x128xf32, #tpu.memory_space<any>>
    %c0_i32_52 = arith.constant 0 : i32
    %c0_i32_53 = arith.constant 0 : i32
    %75 = tpu.memref_slice %arg6[%c0_i32_48, %c0_i32_52, %c0_i32_53] : memref<8x6x128xf32, #tpu.memory_space<vmem>> -> memref<1x6x128xf32, #tpu.memory_space<vmem>>
    %76 = tpu.memref_squeeze %75 : memref<1x6x128xf32, #tpu.memory_space<vmem>> -> memref<6x128xf32, #tpu.memory_space<vmem>>
    %77 = tpu.memref_slice %arg7[%c0_i32_49] : memref<8x!tpu.dma_semaphore, #tpu.memory_space<semaphore_mem>> -> memref<1x!tpu.dma_semaphore, #tpu.memory_space<semaphore_mem>>
    %78 = tpu.memref_squeeze %77 : memref<1x!tpu.dma_semaphore, #tpu.memory_space<semaphore_mem>> -> memref<!tpu.dma_semaphore, #tpu.memory_space<semaphore_mem>>
    tpu.wait_dma2 semaphore(%78 : memref<!tpu.dma_semaphore, #tpu.memory_space<semaphore_mem>>) src(%74 : memref<6x128xf32, #tpu.memory_space<any>>) dst(%76 : memref<6x128xf32, #tpu.memory_space<vmem>>)
    %c1_i32_54 = arith.constant 1 : i32
    %c1_i32_55 = arith.constant 1 : i32
    %c0_i32_56 = arith.constant 0 : i32
    %c0_i32_57 = arith.constant 0 : i32
    %79 = tpu.memref_slice %arg3[%12, %c0_i32_56, %c0_i32_57] : memref<16x6x128xf32, #tpu.memory_space<any>> -> memref<1x6x128xf32, #tpu.memory_space<any>>
    %80 = tpu.memref_squeeze %79 : memref<1x6x128xf32, #tpu.memory_space<any>> -> memref<6x128xf32, #tpu.memory_space<any>>
    %c0_i32_58 = arith.constant 0 : i32
    %c0_i32_59 = arith.constant 0 : i32
    %81 = tpu.memref_slice %arg6[%c1_i32_54, %c0_i32_58, %c0_i32_59] : memref<8x6x128xf32, #tpu.memory_space<vmem>> -> memref<1x6x128xf32, #tpu.memory_space<vmem>>
    %82 = tpu.memref_squeeze %81 : memref<1x6x128xf32, #tpu.memory_space<vmem>> -> memref<6x128xf32, #tpu.memory_space<vmem>>
    %83 = tpu.memref_slice %arg7[%c1_i32_55] : memref<8x!tpu.dma_semaphore, #tpu.memory_space<semaphore_mem>> -> memref<1x!tpu.dma_semaphore, #tpu.memory_space<semaphore_mem>>
    %84 = tpu.memref_squeeze %83 : memref<1x!tpu.dma_semaphore, #tpu.memory_space<semaphore_mem>> -> memref<!tpu.dma_semaphore, #tpu.memory_space<semaphore_mem>>
    tpu.wait_dma2 semaphore(%84 : memref<!tpu.dma_semaphore, #tpu.memory_space<semaphore_mem>>) src(%80 : memref<6x128xf32, #tpu.memory_space<any>>) dst(%82 : memref<6x128xf32, #tpu.memory_space<vmem>>)
    %c2_i32_60 = arith.constant 2 : i32
    %c2_i32_61 = arith.constant 2 : i32
    %c0_i32_62 = arith.constant 0 : i32
    %c0_i32_63 = arith.constant 0 : i32
    %85 = tpu.memref_slice %arg3[%21, %c0_i32_62, %c0_i32_63] : memref<16x6x128xf32, #tpu.memory_space<any>> -> memref<1x6x128xf32, #tpu.memory_space<any>>
    %86 = tpu.memref_squeeze %85 : memref<1x6x128xf32, #tpu.memory_space<any>> -> memref<6x128xf32, #tpu.memory_space<any>>
    %c0_i32_64 = arith.constant 0 : i32
    %c0_i32_65 = arith.constant 0 : i32
    %87 = tpu.memref_slice %arg6[%c2_i32_60, %c0_i32_64, %c0_i32_65] : memref<8x6x128xf32, #tpu.memory_space<vmem>> -> memref<1x6x128xf32, #tpu.memory_space<vmem>>
    %88 = tpu.memref_squeeze %87 : memref<1x6x128xf32, #tpu.memory_space<vmem>> -> memref<6x128xf32, #tpu.memory_space<vmem>>
    %89 = tpu.memref_slice %arg7[%c2_i32_61] : memref<8x!tpu.dma_semaphore, #tpu.memory_space<semaphore_mem>> -> memref<1x!tpu.dma_semaphore, #tpu.memory_space<semaphore_mem>>
    %90 = tpu.memref_squeeze %89 : memref<1x!tpu.dma_semaphore, #tpu.memory_space<semaphore_mem>> -> memref<!tpu.dma_semaphore, #tpu.memory_space<semaphore_mem>>
    tpu.wait_dma2 semaphore(%90 : memref<!tpu.dma_semaphore, #tpu.memory_space<semaphore_mem>>) src(%86 : memref<6x128xf32, #tpu.memory_space<any>>) dst(%88 : memref<6x128xf32, #tpu.memory_space<vmem>>)
    %c3_i32_66 = arith.constant 3 : i32
    %c3_i32_67 = arith.constant 3 : i32
    %c0_i32_68 = arith.constant 0 : i32
    %c0_i32_69 = arith.constant 0 : i32
    %91 = tpu.memref_slice %arg3[%30, %c0_i32_68, %c0_i32_69] : memref<16x6x128xf32, #tpu.memory_space<any>> -> memref<1x6x128xf32, #tpu.memory_space<any>>
    %92 = tpu.memref_squeeze %91 : memref<1x6x128xf32, #tpu.memory_space<any>> -> memref<6x128xf32, #tpu.memory_space<any>>
    %c0_i32_70 = arith.constant 0 : i32
    %c0_i32_71 = arith.constant 0 : i32
    %93 = tpu.memref_slice %arg6[%c3_i32_66, %c0_i32_70, %c0_i32_71] : memref<8x6x128xf32, #tpu.memory_space<vmem>> -> memref<1x6x128xf32, #tpu.memory_space<vmem>>
    %94 = tpu.memref_squeeze %93 : memref<1x6x128xf32, #tpu.memory_space<vmem>> -> memref<6x128xf32, #tpu.memory_space<vmem>>
    %95 = tpu.memref_slice %arg7[%c3_i32_67] : memref<8x!tpu.dma_semaphore, #tpu.memory_space<semaphore_mem>> -> memref<1x!tpu.dma_semaphore, #tpu.memory_space<semaphore_mem>>
    %96 = tpu.memref_squeeze %95 : memref<1x!tpu.dma_semaphore, #tpu.memory_space<semaphore_mem>> -> memref<!tpu.dma_semaphore, #tpu.memory_space<semaphore_mem>>
    tpu.wait_dma2 semaphore(%96 : memref<!tpu.dma_semaphore, #tpu.memory_space<semaphore_mem>>) src(%92 : memref<6x128xf32, #tpu.memory_space<any>>) dst(%94 : memref<6x128xf32, #tpu.memory_space<vmem>>)
    %c4_i32_72 = arith.constant 4 : i32
    %c4_i32_73 = arith.constant 4 : i32
    %c0_i32_74 = arith.constant 0 : i32
    %c0_i32_75 = arith.constant 0 : i32
    %97 = tpu.memref_slice %arg3[%39, %c0_i32_74, %c0_i32_75] : memref<16x6x128xf32, #tpu.memory_space<any>> -> memref<1x6x128xf32, #tpu.memory_space<any>>
    %98 = tpu.memref_squeeze %97 : memref<1x6x128xf32, #tpu.memory_space<any>> -> memref<6x128xf32, #tpu.memory_space<any>>
    %c0_i32_76 = arith.constant 0 : i32
    %c0_i32_77 = arith.constant 0 : i32
    %99 = tpu.memref_slice %arg6[%c4_i32_72, %c0_i32_76, %c0_i32_77] : memref<8x6x128xf32, #tpu.memory_space<vmem>> -> memref<1x6x128xf32, #tpu.memory_space<vmem>>
    %100 = tpu.memref_squeeze %99 : memref<1x6x128xf32, #tpu.memory_space<vmem>> -> memref<6x128xf32, #tpu.memory_space<vmem>>
    %101 = tpu.memref_slice %arg7[%c4_i32_73] : memref<8x!tpu.dma_semaphore, #tpu.memory_space<semaphore_mem>> -> memref<1x!tpu.dma_semaphore, #tpu.memory_space<semaphore_mem>>
    %102 = tpu.memref_squeeze %101 : memref<1x!tpu.dma_semaphore, #tpu.memory_space<semaphore_mem>> -> memref<!tpu.dma_semaphore, #tpu.memory_space<semaphore_mem>>
    tpu.wait_dma2 semaphore(%102 : memref<!tpu.dma_semaphore, #tpu.memory_space<semaphore_mem>>) src(%98 : memref<6x128xf32, #tpu.memory_space<any>>) dst(%100 : memref<6x128xf32, #tpu.memory_space<vmem>>)
    %c5_i32_78 = arith.constant 5 : i32
    %c5_i32_79 = arith.constant 5 : i32
    %c0_i32_80 = arith.constant 0 : i32
    %c0_i32_81 = arith.constant 0 : i32
    %103 = tpu.memref_slice %arg3[%48, %c0_i32_80, %c0_i32_81] : memref<16x6x128xf32, #tpu.memory_space<any>> -> memref<1x6x128xf32, #tpu.memory_space<any>>
    %104 = tpu.memref_squeeze %103 : memref<1x6x128xf32, #tpu.memory_space<any>> -> memref<6x128xf32, #tpu.memory_space<any>>
    %c0_i32_82 = arith.constant 0 : i32
    %c0_i32_83 = arith.constant 0 : i32
    %105 = tpu.memref_slice %arg6[%c5_i32_78, %c0_i32_82, %c0_i32_83] : memref<8x6x128xf32, #tpu.memory_space<vmem>> -> memref<1x6x128xf32, #tpu.memory_space<vmem>>
    %106 = tpu.memref_squeeze %105 : memref<1x6x128xf32, #tpu.memory_space<vmem>> -> memref<6x128xf32, #tpu.memory_space<vmem>>
    %107 = tpu.memref_slice %arg7[%c5_i32_79] : memref<8x!tpu.dma_semaphore, #tpu.memory_space<semaphore_mem>> -> memref<1x!tpu.dma_semaphore, #tpu.memory_space<semaphore_mem>>
    %108 = tpu.memref_squeeze %107 : memref<1x!tpu.dma_semaphore, #tpu.memory_space<semaphore_mem>> -> memref<!tpu.dma_semaphore, #tpu.memory_space<semaphore_mem>>
    tpu.wait_dma2 semaphore(%108 : memref<!tpu.dma_semaphore, #tpu.memory_space<semaphore_mem>>) src(%104 : memref<6x128xf32, #tpu.memory_space<any>>) dst(%106 : memref<6x128xf32, #tpu.memory_space<vmem>>)
    %c6_i32_84 = arith.constant 6 : i32
    %c6_i32_85 = arith.constant 6 : i32
    %c0_i32_86 = arith.constant 0 : i32
    %c0_i32_87 = arith.constant 0 : i32
    %109 = tpu.memref_slice %arg3[%57, %c0_i32_86, %c0_i32_87] : memref<16x6x128xf32, #tpu.memory_space<any>> -> memref<1x6x128xf32, #tpu.memory_space<any>>
    %110 = tpu.memref_squeeze %109 : memref<1x6x128xf32, #tpu.memory_space<any>> -> memref<6x128xf32, #tpu.memory_space<any>>
    %c0_i32_88 = arith.constant 0 : i32
    %c0_i32_89 = arith.constant 0 : i32
    %111 = tpu.memref_slice %arg6[%c6_i32_84, %c0_i32_88, %c0_i32_89] : memref<8x6x128xf32, #tpu.memory_space<vmem>> -> memref<1x6x128xf32, #tpu.memory_space<vmem>>
    %112 = tpu.memref_squeeze %111 : memref<1x6x128xf32, #tpu.memory_space<vmem>> -> memref<6x128xf32, #tpu.memory_space<vmem>>
    %113 = tpu.memref_slice %arg7[%c6_i32_85] : memref<8x!tpu.dma_semaphore, #tpu.memory_space<semaphore_mem>> -> memref<1x!tpu.dma_semaphore, #tpu.memory_space<semaphore_mem>>
    %114 = tpu.memref_squeeze %113 : memref<1x!tpu.dma_semaphore, #tpu.memory_space<semaphore_mem>> -> memref<!tpu.dma_semaphore, #tpu.memory_space<semaphore_mem>>
    tpu.wait_dma2 semaphore(%114 : memref<!tpu.dma_semaphore, #tpu.memory_space<semaphore_mem>>) src(%110 : memref<6x128xf32, #tpu.memory_space<any>>) dst(%112 : memref<6x128xf32, #tpu.memory_space<vmem>>)
    %c7_i32_90 = arith.constant 7 : i32
    %c7_i32_91 = arith.constant 7 : i32
    %c0_i32_92 = arith.constant 0 : i32
    %c0_i32_93 = arith.constant 0 : i32
    %115 = tpu.memref_slice %arg3[%66, %c0_i32_92, %c0_i32_93] : memref<16x6x128xf32, #tpu.memory_space<any>> -> memref<1x6x128xf32, #tpu.memory_space<any>>
    %116 = tpu.memref_squeeze %115 : memref<1x6x128xf32, #tpu.memory_space<any>> -> memref<6x128xf32, #tpu.memory_space<any>>
    %c0_i32_94 = arith.constant 0 : i32
    %c0_i32_95 = arith.constant 0 : i32
    %117 = tpu.memref_slice %arg6[%c7_i32_90, %c0_i32_94, %c0_i32_95] : memref<8x6x128xf32, #tpu.memory_space<vmem>> -> memref<1x6x128xf32, #tpu.memory_space<vmem>>
    %118 = tpu.memref_squeeze %117 : memref<1x6x128xf32, #tpu.memory_space<vmem>> -> memref<6x128xf32, #tpu.memory_space<vmem>>
    %119 = tpu.memref_slice %arg7[%c7_i32_91] : memref<8x!tpu.dma_semaphore, #tpu.memory_space<semaphore_mem>> -> memref<1x!tpu.dma_semaphore, #tpu.memory_space<semaphore_mem>>
    %120 = tpu.memref_squeeze %119 : memref<1x!tpu.dma_semaphore, #tpu.memory_space<semaphore_mem>> -> memref<!tpu.dma_semaphore, #tpu.memory_space<semaphore_mem>>
    tpu.wait_dma2 semaphore(%120 : memref<!tpu.dma_semaphore, #tpu.memory_space<semaphore_mem>>) src(%116 : memref<6x128xf32, #tpu.memory_space<any>>) dst(%118 : memref<6x128xf32, #tpu.memory_space<vmem>>)
    %c0 = arith.constant 0 : index
    %c0_96 = arith.constant 0 : index
    %121 = vector.load %arg2[%c0, %c0_96] : memref<8x6xf32, #tpu.memory_space<vmem>>, vector<8x6xf32>
    %c0_97 = arith.constant 0 : index
    %c0_98 = arith.constant 0 : index
    %c0_99 = arith.constant 0 : index
    %122 = vector.load %arg6[%c0_97, %c0_98, %c0_99] : memref<8x6x128xf32, #tpu.memory_space<vmem>>, vector<8x6x128xf32>
    %123 = vector.shape_cast %121 : vector<8x6xf32> to vector<8x6x1xf32>
    %124 = vector.broadcast %123 : vector<8x6x1xf32> to vector<8x6x128xf32>
    %125 = arith.mulf %122, %124 : vector<8x6x128xf32>
    %126 = vector.extract_strided_slice %125 {offsets = [0, 0, 0], sizes = [8, 3, 128], strides = [1, 1, 1]} : vector<8x6x128xf32> to vector<8x3x128xf32>
    %cst = arith.constant dense<0.000000e+00> : vector<8x128xf32>
    %127 = vector.multi_reduction <add>, %126, %cst [1] : vector<8x3x128xf32> to vector<8x128xf32>
    %c0_100 = arith.constant 0 : index
    %c0_101 = arith.constant 0 : index
    %128 = vector.load %arg4[%c0_100, %c0_101] : memref<8x128xf32, #tpu.memory_space<vmem>>, vector<8x128xf32>
    tpu.vector_store %arg4[%c0_100, %c0_101], %127 {strides = array<i32>} : memref<8x128xf32, #tpu.memory_space<vmem>>, vector<8x128xf32>,
    %129 = vector.extract_strided_slice %125 {offsets = [0, 3, 0], sizes = [8, 3, 128], strides = [1, 1, 1]} : vector<8x6x128xf32> to vector<8x3x128xf32>
    %cst_102 = arith.constant dense<0.000000e+00> : vector<8x128xf32>
    %130 = vector.multi_reduction <add>, %129, %cst_102 [1] : vector<8x3x128xf32> to vector<8x128xf32>
    %c0_103 = arith.constant 0 : index
    %c0_104 = arith.constant 0 : index
    %131 = vector.load %arg5[%c0_103, %c0_104] : memref<8x128xf32, #tpu.memory_space<vmem>>, vector<8x128xf32>
    tpu.vector_store %arg5[%c0_103, %c0_104], %130 {strides = array<i32>} : memref<8x128xf32, #tpu.memory_space<vmem>>, vector<8x128xf32>,
    return
  }
  func.func @transform_0(%arg0: i32, %arg1: memref<16xi32, #tpu.memory_space<smem>>) -> (i32, i32) {
    %c0_i32 = arith.constant 0 : i32
    %c0_i32_0 = arith.constant 0 : i32
    return %arg0, %c0_i32 : i32, i32
  }
  func.func @transform_2(%arg0: i32, %arg1: memref<16xi32, #tpu.memory_space<smem>>) -> (i32, i32) {
    %c0_i32 = arith.constant 0 : i32
    %c0_i32_0 = arith.constant 0 : i32
    return %arg0, %c0_i32 : i32, i32
  }
  func.func @transform_3(%arg0: i32, %arg1: memref<16xi32, #tpu.memory_space<smem>>) -> (i32, i32) {
    %c0_i32 = arith.constant 0 : i32
    %c0_i32_0 = arith.constant 0 : i32
    return %arg0, %c0_i32 : i32, i32
  }
}

</mosaic_0001>

<bundles_post_ra>
// kernel: tpu_custom_call.1
= control target key start
LH: loop header
LB: loop body
LE: loop exit
PB: predicated region body
PF: predicated region fallthrough
CT: control target
= control target key end

     0   :  { %s1546_s0 = inlined_call_operand.vmem [shape: s32[16], index: 0, kind: input, shape index: {}]   ;;  %s1547_s1 = inlined_call_operand.vmem [shape: f32[16,6], index: 1, kind: input, shape index: {}]   ;;  %s1548_s2 = inlined_call_operand.vmem [shape: f32[16,6,128], index: 2, kind: input, shape index: {}]   ;;  %s1549_s3 = inlined_call_operand.hbm [shape: f32[16,128], index: 3, kind: output, shape index: {0}]   ;;  %s1550_s4 = inlined_call_operand.hbm [shape: f32[16,128], index: 4, kind: output, shape index: {1}]  }
   0x1   :  { %s10_s17 = sshll.u32 %s1546_s0, 4  ;;  %s11_s17 = int_to_ptr.vmem [resolvable:$true] %s10_s17 }
   0x2   :  { %s1180_s18 = scalar_lea.vmem %s11_s17, 16  ;;  %p1185_p1 = scmp.lt.s32.totalorder %s11_s17, %s11_s17 }
   0x3   :  { %p1181_p0 = scmp.ne.s32.totalorder %s11_s17, %s1180_s18  ;;  %p1186_p2 = scmp.lt.s32.totalorder %s1180_s18, %s1180_s18 }
   0x5   :  { %p1187_p3 = por %p1186_p2, %p1185_p1 }
   0x7   :  { %p1188_p4 = pnand %p1187_p3, %p1181_p0 }
   0x9   :  { %1191 = shalt.err (!%p1188_p4)  }
   0xa   :  { %s1306_s19 = smov [#allocation5]  }
   0xb   :  { %13 = dma.vmem_to_smem %s11_s17, 16, %s1306_s19, [#allocation4] }
   0xc   :  { %1264 = dma.done.wait [#allocation4], 16 }
   0xd   :  { %1265 = vsyncadd [#allocation4], 4294967280 }
   0xe   :  { %15 = sfence }
   0xf   :  { %16 = vsyncpa [#allocation7], 0 }
  0x10   :  { %18 = vsyncpa [#allocation7 + $0x1], 0 }
  0x11   :  { %19 = vsyncpa [#allocation9], 0 }
  0x12   :  { %21 = vsyncpa [#allocation9 + $0x1], 0  ;;  %s1337_s20 = smov 0   ;;  %s1339_s0 = smov 0  }
  0x13   :  { %s1341_s21 = smov 0   ;;  %s1343_s22 = smov 0  }
  0x14 LB: > { %s1358_s23 = sadd.s32 4294967295, %s1304_s22   ;;  %s1105_s24 = sadd.s32 4294967294, %s1304_s22   ;;  %s1304_s22 = sphi %s1343_s22, %s1556_s22   ;;  %s1300_s21 = sphi %s1341_s21, %s1555_s21   ;;  %s1296_s0 = sphi %s1339_s0, %s1554_s0   ;;  %s1292_s20 = sphi %s1337_s20, %s1553_s20  }
  0x15   : > { %s1362_s25 = sadd.s32 1, %s1304_s22   ;;  %s60_s26 = sadd.s32 1, %s1300_s21 }
  0x16   : > { %s57_s27 = ssub.s32 %s1304_s22, %s1362_s25  ;;  %p70_p5 = scmp.ne.s32.totalorder %s1300_s21, %s1296_s0 }
  0x17   : > { %p58_p6 = scmp.eq.s32.totalorder %s57_s27, 0  ;;  %p71_p7 = scmp.eq.s32.totalorder %s1358_s23, 1 }
  0x18   : > { %p76_p8 = scmp.ne.s32.totalorder %s1296_s0, %s1292_s20  ;;  %p77_p9 = scmp.eq.s32.totalorder %s1105_s24, 1 }
  0x19   : > { %s1373_s28 = scalar_select %p58_p6, %s1300_s21, %s60_s26  }
  0x1a   : > { %p1375_p10 = por %p71_p7, %p70_p5  ;;  %p1379_p11 = por %p77_p9, %p76_p8 }
  0x1b   : > { %p1108_p12 = scmp.ge.s32.totalorder %s1304_s22, 1  ;;  %p128_p13 = scmp.lt.s32.totalorder %s1304_s22, 3 }
  0x1d   : > { %p129_p0 = pnand %p1108_p12, %p128_p13 }
  0x1e   : > { %s1386_s5 = sand.u32 (!%p129_p0), 1, %s1296_s0   ;;  %p154_p1 = scmp.lt.s32.totalorder (!%p129_p0), %s1358_s23, 1 }
  0x1f   : > { %132 = sbr.rel (%p129_p0) target bundleno = 336 (0x150), region = 24  ;;  %s1109_s6 = sshll.u32 (!%p129_p0), %s1386_s5, 3 }
  0x20   : > { %s1391_s7 = sshll.u32 (!%p129_p0), %s1358_s23, 3  ;;  %s1403_s18 = scalar_lea.vmem (!%p129_p0), [#allocation6], %s1109_s6 }
  0x21   : > { %s159_s9 = sld [smem:[#allocation5 + %s1391_s7]] (!%p129_p0)  ;;  %s1405_s19 = scalar_lea.vmem (!%p129_p0), [#allocation8], %s1109_s6 }
  0x26   : > { %s155_s8 = scalar_select %p154_p1, %s1358_s23, 1 }
  0x27   : > { %s1113_s14 = sshll.u32 %s159_s9, 3 }
  0x28   : > { %s1111_s10 = sshll.u32 %s155_s8, 3  ;;  %s161_s17 = scalar_lea.vmem %s1548_s2, %s1113_s14 }
  0x29   : > { %s1398_s13 = scalar_lea.vmem %s1547_s1, %s1111_s10  ;;  %v179_v0 = vld [vmem:[%s161_s17] sm:$0x3f] }
  0x2a   : > { %180 = vst [vmem:[#allocation2] sm:$0x3f] %v179_v0 }
  0x2b   : > { %205 = vsyncadd [#allocation3], 96  ;;  %s206_s24 = sadd.s32 1, %s1391_s7 }
  0x2c   : > { %s207_s26 = sld [smem:[#allocation5 + %s206_s24]] }
  0x32   : > { %s1114_s27 = sshll.u32 %s207_s26, 3 }
  0x33   : > { %s209_s10 = scalar_lea.vmem %s1548_s2, %s1114_s27 }
  0x34   : > { %v229_v1 = vld [vmem:[%s209_s10] sm:$0x3f] }
  0x35   : > { %230 = vst [vmem:[#allocation2 + $0x8] sm:$0x3f] %v229_v1 }
  0x36   : > { %255 = vsyncadd [#allocation3 + $0x1], 96  ;;  %s256_s9 = sadd.s32 2, %s1391_s7 }
  0x37   : > { %s257_s12 = sld [smem:[#allocation5 + %s256_s9]] }
  0x3d   : > { %s1115_s14 = sshll.u32 %s257_s12, 3 }
  0x3e   : > { %s259_s6 = scalar_lea.vmem %s1548_s2, %s1115_s14 }
  0x3f   : > { %v279_v2 = vld [vmem:[%s259_s6] sm:$0x3f] }
  0x40   : > { %280 = vst [vmem:[#allocation2 + $0x10] sm:$0x3f] %v279_v2 }
  0x41   : > { %305 = vsyncadd [#allocation3 + $0x2], 96  ;;  %s306_s17 = sadd.s32 3, %s1391_s7 }
  0x42   : > { %s307_s24 = sld [smem:[#allocation5 + %s306_s17]] }
  0x48   : > { %s1116_s26 = sshll.u32 %s307_s24, 3 }
  0x49   : > { %s309_s11 = scalar_lea.vmem %s1548_s2, %s1116_s26 }
  0x4a   : > { %v329_v3 = vld [vmem:[%s309_s11] sm:$0x3f] }
  0x4b   : > { %330 = vst [vmem:[#allocation2 + $0x18] sm:$0x3f] %v329_v3 }
  0x4c   : > { %355 = vsyncadd [#allocation3 + $0x3], 96  ;;  %s356_s10 = sadd.s32 4, %s1391_s7 }
  0x4d   : > { %s357_s9 = sld [smem:[#allocation5 + %s356_s10]] }
  0x53   : > { %s1117_s12 = sshll.u32 %s357_s9, 3 }
  0x54   : > { %s359_s16 = scalar_lea.vmem %s1548_s2, %s1117_s12 }
  0x55   : > { %v379_v4 = vld [vmem:[%s359_s16] sm:$0x3f] }
  0x56   : > { %380 = vst [vmem:[#allocation2 + $0x20] sm:$0x3f] %v379_v4 }
  0x57   : > { %405 = vsyncadd [#allocation3 + $0x4], 96  ;;  %s406_s6 = sadd.s32 5, %s1391_s7 }
  0x58   : > { %s407_s17 = sld [smem:[#allocation5 + %s406_s6]] }
  0x5e   : > { %s1118_s24 = sshll.u32 %s407_s17, 3 }
  0x5f   : > { %s409_s27 = scalar_lea.vmem %s1548_s2, %s1118_s24 }
  0x60   : > { %v429_v5 = vld [vmem:[%s409_s27] sm:$0x3f] }
  0x61   : > { %430 = vst [vmem:[#allocation2 + $0x28] sm:$0x3f] %v429_v5 }
  0x62   : > { %455 = vsyncadd [#allocation3 + $0x5], 96  ;;  %s456_s11 = sadd.s32 6, %s1391_s7 }
  0x63   : > { %s457_s10 = sld [smem:[#allocation5 + %s456_s11]] }
  0x69   : > { %s1119_s9 = sshll.u32 %s457_s10, 3 }
  0x6a   : > { %s459_s14 = scalar_lea.vmem %s1548_s2, %s1119_s9 }
  0x6b   : > { %v479_v6 = vld [vmem:[%s459_s14] sm:$0x3f] }
  0x6c   : > { %480 = vst [vmem:[#allocation2 + $0x30] sm:$0x3f] %v479_v6 }
  0x6d   : > { %505 = vsyncadd [#allocation3 + $0x6], 96  ;;  %s506_s16 = sadd.s32 7, %s1391_s7 }
  0x6e   : > { %s507_s6 = sld [smem:[#allocation5 + %s506_s16]] }
  0x74   : > { %s1120_s17 = sshll.u32 %s507_s6, 3 }
  0x75   : > { %s509_s26 = scalar_lea.vmem %s1548_s2, %s1120_s17 }
  0x76   : > { %v529_v7 = vld [vmem:[%s509_s26] sm:$0x3f] }
  0x77   : > { %530 = vst [vmem:[#allocation2 + $0x38] sm:$0x3f] %v529_v7 }
  0x78   : > { %555 = vsyncadd [#allocation3 + $0x7], 96 }
  0x79   : > { %1266 = dma.done.wait [#allocation3], 96 }
  0x7a   : > { %1267 = vsyncadd [#allocation3], 4294967200 }
  0x7b   : > { %1268 = dma.done.wait [#allocation3 + $0x1], 96 }
  0x7c   : > { %1269 = vsyncadd [#allocation3 + $0x1], 4294967200 }
  0x7d   : > { %1270 = dma.done.wait [#allocation3 + $0x2], 96 }
  0x7e   : > { %1271 = vsyncadd [#allocation3 + $0x2], 4294967200 }
  0x7f   : > { %1272 = dma.done.wait [#allocation3 + $0x3], 96 }
  0x80   : > { %1273 = vsyncadd [#allocation3 + $0x3], 4294967200 }
  0x81   : > { %1274 = dma.done.wait [#allocation3 + $0x4], 96 }
  0x82   : > { %1275 = vsyncadd [#allocation3 + $0x4], 4294967200 }
  0x83   : > { %1276 = dma.done.wait [#allocation3 + $0x5], 96 }
  0x84   : > { %1277 = vsyncadd [#allocation3 + $0x5], 4294967200 }
  0x85   : > { %1278 = dma.done.wait [#allocation3 + $0x6], 96 }
  0x86   : > { %1279 = vsyncadd [#allocation3 + $0x6], 4294967200 }
  0x87   : > { %1280 = dma.done.wait [#allocation3 + $0x7], 96 }
  0x88   : > { %1281 = vsyncadd [#allocation3 + $0x7], 4294967200  ;;  %v582_v8 = vlaneseq  ;;  %v573_v14 = vld [vmem:[%s1398_s13] sm:$0xff]  ;;  %v576_v27 = vld [vmem:[#allocation2 + $0x10] sm:$0x3f]  ;;  %vm646_vm0 = vcmask 1042432  }
  0x89   : > { %v574_v28 = vld [vmem:[#allocation2] sm:$0x3f]  ;;  %v577_v33 = vld [vmem:[#allocation2 + $0x18] sm:$0x3f]  ;;  %v575_v34 = vld [vmem:[#allocation2 + $0x8] sm:$0x3f] }
  0x8a   : > { %v583_v9 = vshrl.u32 %v582_v8, 7  ;;  %vm711_vm1 = vcmask 1041409   ;;  %vm713_vm2 = vcmask 1042434   ;;  %vm715_vm3 = vcmask 1043459   ;;  %s1123_s7 = sshll.u32 %s1358_s23, 7  ;;  %s843_s13 = sshll.u32 %s1403_s18, 4  ;;  %s1470_s13 = int_to_ptr.vmem [resolvable:$true] %s843_s13 }
  0x8b   : > { %vm717_vm4 = vcmask 1044484   ;;  %vm719_vm5 = vcmask 1045509   ;;  %vm721_vm6 = vcmask 1046534   ;;  %vm723_vm7 = vcmask 1047559   ;;  %s856_s27 = sshll.u32 %s1405_s19, 4  ;;  %s1468_s9 = scalar_lea.hbm %s1549_s3, %s1123_s7  ;;  %s1481_s27 = int_to_ptr.vmem [resolvable:$true] %s856_s27 }
  0x8c   : > { %v598_v10 = vsub.s32 2, %v583_v9  ;;  %v584_v11 = vsub.s32 0, %v583_v9  ;;  %v605_v12 = vsub.s32 3, %v583_v9  ;;  %v591_v13 = vsub.s32 1, %v583_v9  ;;  %s1479_s12 = scalar_lea.hbm %s1550_s4, %s1123_s7  ;;  %s825_s14 = scalar_lea.sflag [#allocation7], %s1386_s5 }
  0x8d   : > { %v619_v19 = vsub.s32 5, %v583_v9  ;;  %v612_v20 = vsub.s32 4, %v583_v9  ;;  %v633_v23 = vsub.s32 7, %v583_v9  ;;  %v626_v24 = vsub.s32 6, %v583_v9  ;;  %s1192_s16 = scalar_lea.vmem %s1470_s13, 128  ;;  %s1307_s6 = smov [#allocation6]  }
  0x8e   : > { %v599_v15 = vrot.slane %v573_v14, %v598_v10  ;;  %v585_v16 = vrot.slane %v573_v14, %v584_v11  ;;  %v606_v17 = vrot.slane %v573_v14, %v605_v12  ;;  %v592_v18 = vrot.slane %v573_v14, %v591_v13  ;;  %v579_v11 = vld [vmem:[#allocation2 + $0x28] sm:$0x3f]  ;;  %v578_v13 = vld [vmem:[#allocation2 + $0x20] sm:$0x3f]  ;;  %p1193_p2 = scmp.ne.s32.totalorder %s1470_s13, %s1192_s16  ;;  %s1196_s17 = sshll.u32 %s1307_s6, 4  ;;  %s1197_s17 = int_to_ptr.vmem [resolvable:$false] %s1196_s17 }
  0x8f   : > { %v620_v21 = vrot.slane %v573_v14, %v619_v19  ;;  %v613_v22 = vrot.slane %v573_v14, %v612_v20  ;;  %v634_v25 = vrot.slane %v573_v14, %v633_v23  ;;  %v627_v26 = vrot.slane %v573_v14, %v626_v24  ;;  %s1198_s8 = scalar_lea.vmem %s1197_s17, 256  ;;  %p1199_p5 = scmp.lt.s32.totalorder %s1470_s13, %s1197_s17 }
  0x90   : > { %601 = vbcast.lane.b32.xlu1 %v599_v15, 256  ;;  %587 = vbcast.lane.b32.xlu0 %v585_v16, 256  ;;  %p1194_p3 = pnand %p1193_p2, %p1375_p10  ;;  %p1200_p6 = scmp.lt.s32.totalorder %s1198_s8, %s1192_s16 }
  0x92   : > { %p1195_p4 = pneg %p1194_p3  ;;  %p1201_p7 = por %p1200_p6, %p1199_p5 }
  0x94   : > { %608 = vbcast.lane.b32.xlu1 %v606_v17, 256  ;;  %594 = vbcast.lane.b32.xlu0 %v592_v18, 256  ;;  %p1202_p8 = pnand %p1201_p7, %p1195_p4 }
  0x98   : > { %622 = vbcast.lane.b32.xlu1 %v620_v21, 256  ;;  %615 = vbcast.lane.b32.xlu0 %v613_v22, 256 }
  0x9c   : > { %636 = vbcast.lane.b32.xlu1 %v634_v25, 256  ;;  %629 = vbcast.lane.b32.xlu0 %v627_v26, 256 }
 0x102   : > { %v602_v29 = vpop.permute.xlu1 %601  ;;  %v588_v30 = vpop.permute.xlu0 %587 }
 0x103   : > { %v640_v31 = vmul.f32 %v602_v29, %v576_v27  ;;  %v638_v32 = vmul.f32 %v588_v30, %v574_v28 }
 0x105   : > { %v661_v35 = vsel %vm646_vm0, %v640_v31, 0.0  ;;  %v737_v36 = vrot.slane %v640_v31, 3  ;;  %v647_v37 = vsel %vm646_vm0, %v638_v32, 0.0  ;;  %v735_v38 = vrot.slane %v638_v32, 3 }
 0x106   : > { %v662_v39 = vrot.slane %v661_v35, 4  ;;  %v648_v40 = vrot.slane %v647_v37, 4  ;;  %v609_v41 = vpop.permute.xlu1 %608  ;;  %v595_v42 = vpop.permute.xlu0 %594 }
 0x107   : > { %v765_v43 = vsel %vm646_vm0, %v737_v36, 0.0  ;;  %v751_v44 = vsel %vm646_vm0, %v735_v38, 0.0  ;;  %v641_v45 = vmul.f32 %v609_v41, %v577_v33  ;;  %v639_v46 = vmul.f32 %v595_v42, %v575_v34  ;;  %v581_v38 = vld [vmem:[#allocation2 + $0x38] sm:$0x3f] }
 0x108   : > { %v663_v47 = vadd.f32 %v662_v39, %v661_v35  ;;  %v766_v48 = vrot.slane %v765_v43, 4  ;;  %v649_v49 = vadd.f32 %v648_v40, %v647_v37  ;;  %v752_v50 = vrot.slane %v751_v44, 4 }
 0x109   : > { %v668_v51 = vsel %vm646_vm0, %v641_v45, 0.0  ;;  %v738_v52 = vrot.slane %v641_v45, 3  ;;  %v654_v53 = vsel %vm646_vm0, %v639_v46, 0.0  ;;  %v736_v54 = vrot.slane %v639_v46, 3 }
 0x10a   : > { %v664_v55 = vrot.slane %v663_v47, 2  ;;  %v767_v56 = vadd.f32 %v766_v48, %v765_v43  ;;  %v650_v57 = vrot.slane %v649_v49, 2  ;;  %v753_v58 = vadd.f32 %v752_v50, %v751_v44  ;;  %v623_v12 = vpop.permute.xlu1 %622  ;;  %v616_v14 = vpop.permute.xlu0 %615  ;;  %v580_v48 = vld [vmem:[#allocation2 + $0x30] sm:$0x3f] }
 0x10b   : > { %v669_v59 = vrot.slane %v668_v51, 4  ;;  %v772_v60 = vsel %vm646_vm0, %v738_v52, 0.0  ;;  %v655_v61 = vrot.slane %v654_v53, 4  ;;  %v758_v62 = vsel %vm646_vm0, %v736_v54, 0.0 }
 0x10c   : > { %v768_v63 = vrot.slane %v767_v56, 2  ;;  %v754_v0 = vrot.slane %v753_v58, 2  ;;  %v665_v1 = vadd.f32 %v664_v55, %v663_v47  ;;  %v759_v4 = vrot.slane %v758_v62, 4 }
 0x10d   : > { %v670_v2 = vadd.f32 %v669_v59, %v668_v51  ;;  %v656_v3 = vadd.f32 %v655_v61, %v654_v53  ;;  %v651_v5 = vadd.f32 %v650_v57, %v649_v49  ;;  %v773_v6 = vrot.slane %v772_v60, 4 }
 0x10e   : > { %v769_v7 = vadd.f32 %v768_v63, %v767_v56  ;;  %v755_v8 = vadd.f32 %v754_v0, %v753_v58  ;;  %v760_v10 = vadd.f32 %v759_v4, %v758_v62  ;;  %v666_v15 = vrot.slane %v665_v1, 1  ;;  %v637_v39 = vpop.permute.xlu1 %636  ;;  %v630_v49 = vpop.permute.xlu0 %629 }
 0x10f   : > { %v657_v9 = vrot.slane %v656_v3, 2  ;;  %v671_v16 = vrot.slane %v670_v2, 2  ;;  %v652_v19 = vrot.slane %v651_v5, 1  ;;  %v643_v20 = vmul.f32 %v623_v12, %v579_v11 }
 0x110   : > { %v761_v18 = vrot.slane %v760_v10, 2  ;;  %v642_v21 = vmul.f32 %v616_v14, %v578_v13  ;;  %v770_v22 = vrot.slane %v769_v7, 1  ;;  %v756_v23 = vrot.slane %v755_v8, 1 }
 0x111   : > { %v658_v17 = vadd.f32 %v657_v9, %v656_v3  ;;  %v774_v24 = vadd.f32 %v773_v6, %v772_v60  ;;  %v682_v26 = vsel %vm646_vm0, %v643_v20, 0.0  ;;  %v740_v27 = vrot.slane %v643_v20, 3 }
 0x112   : > { %v762_v25 = vadd.f32 %v761_v18, %v760_v10  ;;  %v675_v28 = vsel %vm646_vm0, %v642_v21, 0.0  ;;  %v739_v29 = vrot.slane %v642_v21, 3  ;;  %v667_v30 = vadd.f32 %v666_v15, %v665_v1 }
 0x113   : > { %v672_v31 = vadd.f32 %v671_v16, %v670_v2  ;;  %v659_v32 = vrot.slane %v658_v17, 1  ;;  %v683_v34 = vrot.slane %v682_v26, 4  ;;  %v786_v35 = vsel %vm646_vm0, %v740_v27, 0.0 }
 0x114   : > { %v763_v33 = vrot.slane %v762_v25, 1  ;;  %v676_v36 = vrot.slane %v675_v28, 4  ;;  %v779_v37 = vsel %vm646_vm0, %v739_v29, 0.0  ;;  %v771_v40 = vadd.f32 %v770_v22, %v769_v7 }
 0x115   : > { %v653_v41 = vadd.f32 %v652_v19, %v651_v5  ;;  %v775_v42 = vrot.slane %v774_v24, 2  ;;  %v787_v43 = vrot.slane %v786_v35, 4  ;;  %v757_v44 = vadd.f32 %v756_v23, %v755_v8 }
 0x116   : > { %v684_v45 = vadd.f32 %v683_v34, %v682_v26  ;;  %v677_v46 = vadd.f32 %v676_v36, %v675_v28  ;;  %v780_v47 = vrot.slane %v779_v37, 4  ;;  %v673_v50 = vrot.slane %v672_v31, 1 }
 0x117   : > { %v660_v51 = vadd.f32 %v659_v32, %v658_v17  ;;  %v788_v52 = vadd.f32 %v787_v43, %v786_v35  ;;  %v645_v53 = vmul.f32 %v637_v39, %v581_v38  ;;  %v764_v54 = vadd.f32 %v763_v33, %v762_v25 }
 0x118   : > { %v685_v55 = vrot.slane %v684_v45, 2  ;;  %v678_v56 = vrot.slane %v677_v46, 2  ;;  %v781_v57 = vadd.f32 %v780_v47, %v779_v37  ;;  %v776_v58 = vadd.f32 %v775_v42, %v774_v24 }
 0x119   : > { %v696_v59 = vsel %vm646_vm0, %v645_v53, 0.0  ;;  %v742_v60 = vrot.slane %v645_v53, 3  ;;  %v644_v61 = vmul.f32 %v630_v49, %v580_v48  ;;  %v789_v62 = vrot.slane %v788_v52, 2 }
 0x11a   : > { %v679_v63 = vadd.f32 %v678_v56, %v677_v46  ;;  %v782_v0 = vrot.slane %v781_v57, 2  ;;  %v697_v1 = vrot.slane %v696_v59, 4  ;;  %v712_v2 = vsel %vm711_vm1, %v660_v51, %v653_v41 }
 0x11b   : > { %v800_v3 = vsel %vm646_vm0, %v742_v60, 0.0  ;;  %v689_v4 = vsel %vm646_vm0, %v644_v61, 0.0  ;;  %v741_v5 = vrot.slane %v644_v61, 3  ;;  %v815_v6 = vsel %vm711_vm1, %v764_v54, %v757_v44 }
 0x11c   : > { %v686_v7 = vadd.f32 %v685_v55, %v684_v45  ;;  %v783_v8 = vadd.f32 %v782_v0, %v781_v57  ;;  %v698_v9 = vadd.f32 %v697_v1, %v696_v59  ;;  %v680_v10 = vrot.slane %v679_v63, 1 }
 0x11d   : > { %v801_v11 = vrot.slane %v800_v3, 4  ;;  %v690_v12 = vrot.slane %v689_v4, 4  ;;  %v793_v13 = vsel %vm646_vm0, %v741_v5, 0.0  ;;  %v777_v14 = vrot.slane %v776_v58, 1 }
 0x11e   : > { %v714_v15 = vsel %vm713_vm2, %v667_v30, %v712_v2  ;;  %v790_v16 = vadd.f32 %v789_v62, %v788_v52  ;;  %v699_v17 = vrot.slane %v698_v9, 2  ;;  %v784_v18 = vrot.slane %v783_v8, 1 }
 0x11f   : > { %v802_v19 = vadd.f32 %v801_v11, %v800_v3  ;;  %v691_v20 = vadd.f32 %v690_v12, %v689_v4  ;;  %v794_v21 = vrot.slane %v793_v13, 4  ;;  %v674_v22 = vadd.f32 %v673_v50, %v672_v31 }
 0x120   : > { %v816_v23 = vsel %vm713_vm2, %v771_v40, %v815_v6  ;;  %v687_v24 = vrot.slane %v686_v7, 1  ;;  %v700_v25 = vadd.f32 %v699_v17, %v698_v9  ;;  %v681_v26 = vadd.f32 %v680_v10, %v679_v63 }
 0x121   : > { %v803_v27 = vrot.slane %v802_v19, 2  ;;  %v692_v28 = vrot.slane %v691_v20, 2  ;;  %v795_v29 = vadd.f32 %v794_v21, %v793_v13  ;;  %v778_v32 = vadd.f32 %v777_v14, %v776_v58 }
 0x122   : > { %v791_v33 = vrot.slane %v790_v16, 1  ;;  %v716_v34 = vsel %vm715_vm3, %v674_v22, %v714_v15  ;;  %v701_v30 = vrot.slane %v700_v25, 1  ;;  %v785_v35 = vadd.f32 %v784_v18, %v783_v8 }
 0x123   : > { %v804_v36 = vadd.f32 %v803_v27, %v802_v19  ;;  %v693_v37 = vadd.f32 %v692_v28, %v691_v20  ;;  %v796_v38 = vrot.slane %v795_v29, 2  ;;  %v688_v31 = vadd.f32 %v687_v24, %v686_v7 }
 0x124   : > { %v817_v39 = vsel %vm715_vm3, %v778_v32, %v816_v23  ;;  %v718_v40 = vsel %vm717_vm4, %v681_v26, %v716_v34  ;;  %v792_v44 = vadd.f32 %v791_v33, %v790_v16  ;;  %v702_v45 = vadd.f32 %v701_v30, %v700_v25 }
 0x125   : > { %v805_v41 = vrot.slane %v804_v36, 1  ;;  %v694_v42 = vrot.slane %v693_v37, 1  ;;  %v797_v43 = vadd.f32 %v796_v38, %v795_v29  ;;  %v818_v48 = vsel %vm717_vm4, %v785_v35, %v817_v39 }
 0x126   : > { %v720_v50 = vsel %vm719_vm5, %v688_v31, %v718_v40  ;;  %v819_v54 = vsel %vm719_vm5, %v792_v44, %v818_v48 }
 0x127   : > { %v695_v46 = vadd.f32 %v694_v42, %v693_v37  ;;  %v798_v47 = vrot.slane %v797_v43, 1  ;;  %v806_v49 = vadd.f32 %v805_v41, %v804_v36 }
 0x129   : > { %v799_v51 = vadd.f32 %v798_v47, %v797_v43  ;;  %v722_v52 = vsel %vm721_vm6, %v695_v46, %v720_v50 }
 0x12a   : > { %v724_v53 = vsel %vm723_vm7, %v702_v45, %v722_v52 }
 0x12b   : > { %726 = vst [vmem:[%s1403_s18] sm:$0xff] %v724_v53  ;;  %v820_v55 = vsel %vm721_vm6, %v799_v51, %v819_v54 }
 0x12c   : > { %1205 = shalt.err (!%p1202_p8)
}
 0x12d   : > { %s1206_s18 = scalar_lea.hbm %s1468_s9, 128  ;;  %s1210_s7 = scalar_lea.hbm %s1549_s3, 256 }
 0x12e   : > { %p1207_p9 = scmp.ne.s32.totalorder %s1468_s9, %s1206_s18  ;;  %p1211_p0 = scmp.lt.u32.totalorder %s1468_s9, %s1549_s3 }
 0x12f   : > { %p1212_p1 = scmp.lt.u32.totalorder %s1210_s7, %s1206_s18  ;;  %p1214_p3 = scmp.lt.u32.totalorder %s1206_s18, %s1468_s9 }
 0x130   : > { %p1208_p12 = pnand %p1207_p9, %p1375_p10 }
 0x131   : > { %p1213_p2 = por %p1212_p1, %p1211_p0 }
 0x132   : > { %p1209_p13 = pneg %p1208_p12 }
 0x133   : > { %p1215_p4 = por %p1214_p3, %p1213_p2 }
 0x135   : > { %p1216_p5 = pnand %p1215_p4, %p1209_p13 }
 0x137   : > { %1219 = shalt.err (!%p1216_p5)
}
 0x138   : > { %1135 = dma.vmem_to_hbm [thread:$0]  (%p1375_p10), %s1470_s13, 128, %s1468_s9, %s825_s14   ;;  %v821_v56 = vsel %vm723_vm7, %v806_v49, %v820_v55 }
 0x139   : > { %823 = vst [vmem:[%s1405_s19] sm:$0xff] %v821_v56  ;;  %s830_s23 = scalar_lea.sflag [#allocation9], %s1386_s5  ;;  %s1220_s15 = scalar_lea.vmem %s1481_s27, 128 }
 0x13a   : > { %p1221_p6 = scmp.ne.s32.totalorder %s1481_s27, %s1220_s15  ;;  %s1308_s16 = smov [#allocation8]  }
 0x13b   : > { %s1224_s6 = sshll.u32 %s1308_s16, 4  ;;  %s1225_s6 = int_to_ptr.vmem [resolvable:$false] %s1224_s6 }
 0x13c   : > { %p1222_p7 = pnand %p1221_p6, %p1375_p10  ;;  %s1226_s17 = scalar_lea.vmem %s1225_s6, 256 }
 0x13d   : > { %p1227_p9 = scmp.lt.s32.totalorder %s1481_s27, %s1225_s6  ;;  %p1228_p12 = scmp.lt.s32.totalorder %s1226_s17, %s1220_s15 }
 0x13e   : > { %p1223_p8 = pneg %p1222_p7 }
 0x13f   : > { %p1229_p13 = por %p1228_p12, %p1227_p9 }
 0x141   : > { %p1230_p0 = pnand %p1229_p13, %p1223_p8 }
 0x143   : > { %1233 = shalt.err (!%p1230_p0)
}
 0x144   : > { %s1234_s5 = scalar_lea.hbm %s1479_s12, 128  ;;  %s1238_s9 = scalar_lea.hbm %s1550_s4, 256 }
 0x145   : > { %p1235_p1 = scmp.ne.s32.totalorder %s1479_s12, %s1234_s5  ;;  %p1239_p4 = scmp.lt.u32.totalorder %s1479_s12, %s1550_s4 }
 0x146   : > { %p1240_p5 = scmp.lt.u32.totalorder %s1238_s9, %s1234_s5  ;;  %p1242_p7 = scmp.lt.u32.totalorder %s1234_s5, %s1479_s12 }
 0x147   : > { %p1236_p2 = pnand %p1235_p1, %p1375_p10 }
 0x148   : > { %p1241_p6 = por %p1240_p5, %p1239_p4 }
 0x149   : > { %p1237_p3 = pneg %p1236_p2 }
 0x14a   : > { %p1243_p8 = por %p1242_p7, %p1241_p6 }
 0x14c   : > { %p1244_p9 = pnand %p1243_p8, %p1237_p3 }
 0x14e   : > { %1247 = shalt.err (!%p1244_p9)
}
 0x14f   : > { %1136 = dma.vmem_to_hbm [thread:$0]  (%p1375_p10), %s1481_s27, 128, %s1479_s12, %s830_s23  }
 0x150 PF: > { %p1146_p12 = scmp.ge.s32.totalorder %s1304_s22, 2  ;;  %s868_s18 = sand.u32 1, %s1292_s20  }
 0x151   : > { %s869_s24 = scalar_lea.sflag [#allocation7], %s868_s18 }
 0x152   : > { %p1140_p13 = pnand %p1146_p12, %p1379_p11 }
 0x154   : > { %1283 = dma.done.wait (!%p1140_p13), %s869_s24, 128  }
 0x155   : > { %1285 = vsyncadd (!%p1140_p13), %s869_s24, 4294967168  ;;  %s878_s26 = scalar_lea.sflag [#allocation9], %s868_s18 }
 0x156   : > { %1287 = dma.done.wait (!%p1140_p13), %s878_s26, 128  }
 0x157   : > { %1289 = vsyncadd (!%p1140_p13), %s878_s26, 4294967168  ;;  %p24_p10 = scmp.ge.s32.totalorder %s1362_s25, 4   ;;  %s1553_s20 = smov %s1296_s0 }
 0x158   : > { %s1554_s0 = smov %s1300_s21  ;;  %s1555_s21 = smov %s1373_s28 }
 0x159   : > { %s1556_s22 = smov %s1362_s25  ;;  %26 = sbr.rel (!%p24_p10) target bundleno = 20 (0x14), region = 425 }
 0x160   :  { %883 = vsyncpa [#allocation7], 1 }
 0x161   :  { %885 = vsyncpa [#allocation7 + $0x1], 1 }
 0x162   :  { %886 = vsyncpa [#allocation9], 1 }
 0x163   :  { %888 = vsyncpa [#allocation9 + $0x1], 1 }
 0x164   :  { %889 = vsyncmov [#allocation3] }
 0x167   :  { %s890_s22 = vpop.sfrf %889 }
 0x168   :  { %p1127_p11 = scmp.ne.s32.totalorder %s890_s22, 0 }
 0x16a   :  { %894 = shalt.err (%p1127_p11)  }
 0x16b   :  { %896 = vsyncmov [#allocation3 + $0x1] }
 0x16e   :  { %s897_s29 = vpop.sfrf %896 }
 0x16f   :  { %p1128_p0 = scmp.ne.s32.totalorder %s897_s29, 0 }
 0x171   :  { %901 = shalt.err (%p1128_p0)  }
 0x172   :  { %903 = vsyncmov [#allocation3 + $0x2] }
 0x175   :  { %s904_s30 = vpop.sfrf %903 }
 0x176   :  { %p1129_p1 = scmp.ne.s32.totalorder %s904_s30, 0 }
 0x178   :  { %908 = shalt.err (%p1129_p1)  }
 0x179   :  { %910 = vsyncmov [#allocation3 + $0x3] }
 0x17c   :  { %s911_s28 = vpop.sfrf %910 }
 0x17d   :  { %p1130_p2 = scmp.ne.s32.totalorder %s911_s28, 0 }
 0x17f   :  { %915 = shalt.err (%p1130_p2)  }
 0x180   :  { %917 = vsyncmov [#allocation3 + $0x4] }
 0x183   :  { %s918_s1 = vpop.sfrf %917 }
 0x184   :  { %p1131_p3 = scmp.ne.s32.totalorder %s918_s1, 0 }
 0x186   :  { %922 = shalt.err (%p1131_p3)  }
 0x187   :  { %924 = vsyncmov [#allocation3 + $0x5] }
 0x18a   :  { %s925_s2 = vpop.sfrf %924 }
 0x18b   :  { %p1132_p4 = scmp.ne.s32.totalorder %s925_s2, 0 }
 0x18d   :  { %929 = shalt.err (%p1132_p4)  }
 0x18e   :  { %931 = vsyncmov [#allocation3 + $0x6] }
 0x191   :  { %s932_s3 = vpop.sfrf %931 }
 0x192   :  { %p1133_p5 = scmp.ne.s32.totalorder %s932_s3, 0 }
 0x194   :  { %936 = shalt.err (%p1133_p5)  }
 0x195   :  { %938 = vsyncmov [#allocation3 + $0x7] }
 0x198   :  { %s939_s4 = vpop.sfrf %938 }
 0x199   :  { %p1134_p6 = scmp.ne.s32.totalorder %s939_s4, 0 }
 0x19b   :  { %943 = shalt.err (%p1134_p6)  }

</bundles_post_ra>
